<compile_context>
chip_gen: v7x
topology: tpu7x:2x2x1
jax: 0.10.0
libtpu: 0.0.40
codegen_flags: <defaults>
</compile_context>

<pallas_src>
import jax
import jax.numpy as jnp
from jax.experimental import pallas as pl
from jax.experimental.pallas import tpu as pltpu

IN_FEATURES = 103
HIDDEN = 50
HIDDEN_PAD = 64        # zero-padded hidden width (lane/sublane friendly)
NUM_CLASSES = 2


def net1_kernel(x_ref, w1_ref, b1_ref, wd_ref, bd_ref, o_ref):
    # fc1: bf16 operands on the MXU, f32 accumulation. Padded hidden cols of w1/b1 are
    # zero, so they contribute 0 to the class-difference logit below (wd pad is also 0).
    z = jnp.dot(x_ref[...], w1_ref[...], preferred_element_type=jnp.float32) + b1_ref[...]

    # sigmoid(z) = 0.5 * tanh(z/2) + 0.5  -> a single EUP transcendental per element.
    h = 0.5 * jnp.tanh(0.5 * z) + 0.5
    # TODO(synk): Dropout(p=0.2) is identity in eval/inference mode; no PRNG masking applied.

    # fc2 collapsed to the class-difference logit, computed transposed (batch on lanes):
    #   d[0, b] = sum_f (w2[f,1] - w2[f,0]) * h[b, f] + (b2[1] - b2[0])
    d = jax.lax.dot_general(
        wd_ref[...], h,
        dimension_numbers=(((1,), (1,)), ((), ())),
        preferred_element_type=jnp.float32,
    ) + bd_ref[...]                                                        # [1, TB]

    # Closed-form 2-class log_softmax (stable softplus; pure VPU/EUP, no cross-lane work):
    #   out0 = -softplus(d), out1 = d - softplus(d)
    sp = jnp.maximum(d, 0.0) + jnp.log(1.0 + jnp.exp(-jnp.abs(d)))         # softplus(d)
    row = jax.lax.broadcasted_iota(jnp.int32, o_ref.shape, 0)              # 0 / 1 per sublane
    o_ref[...] = jnp.where(row == 0, -sp, d - sp).astype(o_ref.dtype)      # one [2, TB] store


def _net1_call(x_arr, params, tile_b, n_tiles):
    """One pallas_call producing log-probs (transposed, [2, n_tiles*tile_b]) for the
    first n_tiles*tile_b rows of x_arr."""
    w1p, b1p, wd, bd = params
    b_out = n_tiles * tile_b
    x_bytes = jnp.dtype(x_arr.dtype).itemsize
    cost = pl.CostEstimate(
        flops=2 * b_out * IN_FEATURES * HIDDEN_PAD + 2 * b_out * HIDDEN_PAD,
        transcendentals=b_out * HIDDEN_PAD + 2 * b_out,
        bytes_accessed=(b_out * IN_FEATURES * x_bytes
                        + NUM_CLASSES * b_out * 4
                        + IN_FEATURES * HIDDEN_PAD * 2 + (2 * HIDDEN_PAD + 1) * 4),
    )
    return pl.pallas_call(
        net1_kernel,
        out_shape=jax.ShapeDtypeStruct((NUM_CLASSES, b_out), jnp.float32),
        grid=(n_tiles,),
        in_specs=[
            pl.BlockSpec((tile_b, IN_FEATURES), lambda i: (i, 0)),  # x: streamed tiles
            pl.BlockSpec(w1p.shape, lambda i: (0, 0)),              # weights VMEM-resident
            pl.BlockSpec(b1p.shape, lambda i: (0, 0)),
            pl.BlockSpec(wd.shape, lambda i: (0, 0)),
            pl.BlockSpec(bd.shape, lambda i: (0, 0)),
        ],
        out_specs=pl.BlockSpec((NUM_CLASSES, tile_b), lambda i: (0, i)),
        compiler_params=pltpu.CompilerParams(
            dimension_semantics=("parallel",),          # v7x: shard batch tiles across 2 TCs
            vmem_limit_bytes=32 * 1024 * 1024,
        ),
        cost_estimate=cost,
    )(x_arr, w1p, b1p, wd, bd)


def net1_forward(x, w1p, b1p, wd, bd, *, max_tile_b=8192, min_tiles=2):
    """x: [..., 103] (any leading dims; flattened like x.view(-1, 103)). bf16 x is
    recommended (halves the dominant HBM stream); f32 also accepted.
    Returns log-probabilities of shape [B, 2] (float32)."""
    x = x.reshape(-1, IN_FEATURES)
    B = x.shape[0]
    params = (w1p, b1p, wd, bd)

    # Main chunk: tiles that are a multiple of 128 rows (lane-dense transposed output
    # stores), sized to give at least `min_tiles` grid steps (megacore) up to max_tile_b.
    tile_b = (min(max_tile_b, B // min_tiles) // 128) * 128
    parts = []
    if tile_b > 0:
        n_full = B // tile_b                      # >= min_tiles by construction
        b_main = n_full * tile_b
        # Reads only rows [0, b_main) of the original x -- no padded copy of x.
        parts.append(_net1_call(x, params, tile_b, n_full))
    else:
        b_main = 0
    if b_main < B:
        # Ragged tail (< tile_b rows): single full-block call on a small slice.
        x_tail = x if b_main == 0 else x[b_main:]
        parts.append(_net1_call(x_tail, params, B - b_main, 1))

    out_t = parts[0] if len(parts) == 1 else jnp.concatenate(parts, axis=1)
    return out_t.T                                # tiny [2, B] -> [B, 2] transpose


def init_params(key):
    """PyTorch-style U(-1/sqrt(fan_in), 1/sqrt(fan_in)) init.
    Returns (kernel_params, reference_params)."""
    k1, k2, k3, k4 = jax.random.split(key, 4)
    bound1 = 1.0 / jnp.sqrt(103.0)
    bound2 = 1.0 / jnp.sqrt(50.0)
    w1 = jax.random.uniform(k1, (IN_FEATURES, HIDDEN), jnp.float32, -bound1, bound1)
    b1 = jax.random.uniform(k2, (HIDDEN,), jnp.float32, -bound1, bound1)
    w2 = jax.random.uniform(k3, (HIDDEN, NUM_CLASSES), jnp.float32, -bound2, bound2)
    b2 = jax.random.uniform(k4, (NUM_CLASSES,), jnp.float32, -bound2, bound2)

    hpad = HIDDEN_PAD - HIDDEN
    w1p = jnp.pad(w1, ((0, 0), (0, hpad))).astype(jnp.bfloat16)             # [103, 64] bf16
    b1p = jnp.pad(b1.reshape(1, HIDDEN), ((0, 0), (0, hpad)))               # [1, 64]  f32
    wd = jnp.pad((w2[:, 1] - w2[:, 0]).reshape(1, HIDDEN), ((0, 0), (0, hpad)))  # [1, 64] f32
    bd = (b2[1] - b2[0]).reshape(1, 1)                                      # [1, 1]   f32
    return (w1p, b1p, wd, bd), (w1, b1, w2, b2)


def reference(x, w1p_bf16, b1, w2, b2):
    """f32 reference on the same bf16-rounded x / w1 the kernel consumes."""
    xf = x.astype(jnp.float32)
    w1f = w1p_bf16[:, :HIDDEN].astype(jnp.float32)
    h = jax.nn.sigmoid(xf @ w1f + b1.reshape(1, HIDDEN))
    return jax.nn.log_softmax(h @ w2 + b2, axis=1)


if __name__ == "__main__":
    key = jax.random.PRNGKey(0)
    kx, kx2, kp = jax.random.split(key, 3)

    (w1p, b1p, wd, bd), (w1, b1, w2, b2) = init_params(kp)

    # Small example matching the PyTorch module: batch of 8 vectors of length 103.
    B = 8
    x = jax.random.normal(kx, (B, 1, IN_FEATURES), jnp.float32).astype(jnp.bfloat16)
    out = jax.block_until_ready(net1_forward(x, w1p, b1p, wd, bd))
    ref = reference(x.reshape(-1, IN_FEATURES), w1p, b1, w2, b2)
    assert out.shape == (B, NUM_CLASSES)
    assert jnp.allclose(out, ref, atol=2e-3), "small-batch mismatch vs reference"

    # Larger ragged batch: exercises the tiled main call (>=2 parallel tiles) + tail call.
    B2 = 1000
    x2 = jax.random.normal(kx2, (B2, IN_FEATURES), jnp.float32).astype(jnp.bfloat16)
    out2 = jax.block_until_ready(net1_forward(x2, w1p, b1p, wd, bd, max_tile_b=4096))
    ref2 = reference(x2, w1p, b1, w2, b2)
    assert out2.shape == (B2, NUM_CLASSES)
    assert jnp.allclose(out2, ref2, atol=2e-3), "tiled-batch mismatch vs reference"

    print("KERNEL_OK")
</pallas_src>

<mosaic_0001>
module attributes {stable_mosaic.version = 11 : i64} {
  func.func @net1_kernel(%arg0: i32, %arg1: memref<8x103xbf16, #tpu.memory_space<vmem>>, %arg2: memref<103x64xbf16, #tpu.memory_space<vmem>>, %arg3: memref<1x64xf32, #tpu.memory_space<vmem>>, %arg4: memref<1x64xf32, #tpu.memory_space<vmem>>, %arg5: memref<1x1xf32, #tpu.memory_space<vmem>>, %arg6: memref<2x8xf32, #tpu.memory_space<vmem>>) attributes {dimension_semantics = [#tpu.dimension_semantics<parallel>], iteration_bounds = array<i64: 1>, scalar_prefetch = 0 : i64, scratch_operands = 0 : i64, tpu.core_type = #tpu.core_type<tc>, window_params = [{transform_indices = @transform_0, window_bounds = array<i64: 8, 103>}, {pipeline_mode = #tpu.pipeline_mode<synchronous>, transform_indices = @transform_1, window_bounds = array<i64: 103, 64>}, {pipeline_mode = #tpu.pipeline_mode<synchronous>, transform_indices = @transform_2, window_bounds = array<i64: 1, 64>}, {pipeline_mode = #tpu.pipeline_mode<synchronous>, transform_indices = @transform_3, window_bounds = array<i64: 1, 64>}, {pipeline_mode = #tpu.pipeline_mode<synchronous>, transform_indices = @transform_4, window_bounds = array<i64: 1, 1>}, {transform_indices = @transform_5, window_bounds = array<i64: 2, 8>}]} {
    %c0 = arith.constant 0 : index
    %c0_0 = arith.constant 0 : index
    %0 = vector.load %arg1[%c0, %c0_0] : memref<8x103xbf16, #tpu.memory_space<vmem>>, vector<8x103xbf16>
    %c0_1 = arith.constant 0 : index
    %c0_2 = arith.constant 0 : index
    %1 = vector.load %arg2[%c0_1, %c0_2] : memref<103x64xbf16, #tpu.memory_space<vmem>>, vector<103x64xbf16>
    %cst = arith.constant dense<0.000000e+00> : vector<8x64xf32>
    %2 = tpu.matmul %0, %1, %cst {dimension_numbers = #tpu.dot_dimension_numbers<[1], [0], [0], [1], [0, 0, 1, 1], [], []>} : vector<8x103xbf16>, vector<103x64xbf16>, vector<8x64xf32> -> vector<8x64xf32>
    %c0_3 = arith.constant 0 : index
    %c0_4 = arith.constant 0 : index
    %3 = vector.load %arg3[%c0_3, %c0_4] : memref<1x64xf32, #tpu.memory_space<vmem>>, vector<1x64xf32>
    %4 = vector.broadcast %3 : vector<1x64xf32> to vector<8x64xf32>
    %5 = arith.addf %2, %4 : vector<8x64xf32>
    %cst_5 = arith.constant 5.000000e-01 : f32
    %6 = vector.broadcast %cst_5 : f32 to vector<8x64xf32>
    %7 = arith.mulf %6, %5 : vector<8x64xf32>
    %8 = math.tanh %7 : vector<8x64xf32>
    %cst_6 = arith.constant 5.000000e-01 : f32
    %9 = vector.broadcast %cst_6 : f32 to vector<8x64xf32>
    %10 = arith.mulf %9, %8 : vector<8x64xf32>
    %cst_7 = arith.constant 5.000000e-01 : f32
    %11 = vector.broadcast %cst_7 : f32 to vector<8x64xf32>
    %12 = arith.addf %10, %11 : vector<8x64xf32>
    %c0_8 = arith.constant 0 : index
    %c0_9 = arith.constant 0 : index
    %13 = vector.load %arg4[%c0_8, %c0_9] : memref<1x64xf32, #tpu.memory_space<vmem>>, vector<1x64xf32>
    %cst_10 = arith.constant dense<0.000000e+00> : vector<1x8xf32>
    %14 = tpu.matmul %13, %12, %cst_10 {dimension_numbers = #tpu.dot_dimension_numbers<[1], [1], [0], [0], [0, 0, 1, 0], [], []>} : vector<1x64xf32>, vector<8x64xf32>, vector<1x8xf32> -> vector<1x8xf32>
    %c0_11 = arith.constant 0 : index
    %c0_12 = arith.constant 0 : index
    %15 = vector.load %arg5[%c0_11, %c0_12] : memref<1x1xf32, #tpu.memory_space<vmem>>, vector<1x1xf32>
    %16 = vector.broadcast %15 : vector<1x1xf32> to vector<1x8xf32>
    %17 = arith.addf %14, %16 : vector<1x8xf32>
    %cst_13 = arith.constant 0.000000e+00 : f32
    %18 = vector.broadcast %cst_13 : f32 to vector<1x8xf32>
    %19 = arith.maximumf %17, %18 : vector<1x8xf32>
    %20 = math.absf %17 : vector<1x8xf32>
    %cst_14 = arith.constant 0.000000e+00 : f32
    %21 = vector.broadcast %cst_14 : f32 to vector<1x8xf32>
    %22 = arith.subf %21, %20 : vector<1x8xf32>
    %23 = math.exp %22 : vector<1x8xf32>
    %cst_15 = arith.constant 1.000000e+00 : f32
    %24 = vector.broadcast %cst_15 : f32 to vector<1x8xf32>
    %25 = arith.addf %24, %23 : vector<1x8xf32>
    %26 = math.log %25 : vector<1x8xf32>
    %27 = arith.addf %19, %26 : vector<1x8xf32>
    %28 = tpu.iota {dimensions = array<i32: 0>} : vector<2x8xi32>
    %c0_i32 = arith.constant 0 : i32
    %29 = vector.broadcast %c0_i32 : i32 to vector<2x8xi32>
    %30 = arith.cmpi eq, %28, %29 : vector<2x8xi32>
    %cst_16 = arith.constant 0.000000e+00 : f32
    %31 = vector.broadcast %cst_16 : f32 to vector<1x8xf32>
    %32 = arith.subf %31, %27 : vector<1x8xf32>
    %33 = arith.subf %17, %27 : vector<1x8xf32>
    %34 = vector.shape_cast %32 : vector<1x8xf32> to vector<1x8xf32>
    %35 = vector.broadcast %34 : vector<1x8xf32> to vector<2x8xf32>
    %36 = vector.shape_cast %33 : vector<1x8xf32> to vector<1x8xf32>
    %37 = vector.broadcast %36 : vector<1x8xf32> to vector<2x8xf32>
    %38 = arith.select %30, %35, %37 : vector<2x8xi1>, vector<2x8xf32>
    %c0_17 = arith.constant 0 : index
    %c0_18 = arith.constant 0 : index
    %39 = vector.load %arg6[%c0_17, %c0_18] : memref<2x8xf32, #tpu.memory_space<vmem>>, vector<2x8xf32>
    tpu.vector_store %arg6[%c0_17, %c0_18], %38 {strides = array<i32>} : memref<2x8xf32, #tpu.memory_space<vmem>>, vector<2x8xf32>,
    return
  }
  func.func @transform_0(%arg0: i32) -> (i32, i32) {
    %c0_i32 = arith.constant 0 : i32
    %c0_i32_0 = arith.constant 0 : i32
    return %arg0, %c0_i32 : i32, i32
  }
  func.func @transform_1(%arg0: i32) -> (i32, i32) {
    %c0_i32 = arith.constant 0 : i32
    %c0_i32_0 = arith.constant 0 : i32
    %c0_i32_1 = arith.constant 0 : i32
    return %c0_i32, %c0_i32_0 : i32, i32
  }
  func.func @transform_2(%arg0: i32) -> (i32, i32) {
    %c0_i32 = arith.constant 0 : i32
    %c0_i32_0 = arith.constant 0 : i32
    %c0_i32_1 = arith.constant 0 : i32
    return %c0_i32, %c0_i32_0 : i32, i32
  }
  func.func @transform_3(%arg0: i32) -> (i32, i32) {
    %c0_i32 = arith.constant 0 : i32
    %c0_i32_0 = arith.constant 0 : i32
    %c0_i32_1 = arith.constant 0 : i32
    return %c0_i32, %c0_i32_0 : i32, i32
  }
  func.func @transform_4(%arg0: i32) -> (i32, i32) {
    %c0_i32 = arith.constant 0 : i32
    %c0_i32_0 = arith.constant 0 : i32
    %c0_i32_1 = arith.constant 0 : i32
    return %c0_i32, %c0_i32_0 : i32, i32
  }
  func.func @transform_5(%arg0: i32) -> (i32, i32) {
    %c0_i32 = arith.constant 0 : i32
    %c0_i32_0 = arith.constant 0 : i32
    return %c0_i32, %arg0 : i32, i32
  }
}

</mosaic_0001>

<bundles_post_ra>
// kernel: tpu_custom_call.1
= control target key start
LH: loop header
LB: loop body
LE: loop exit
PB: predicated region body
PF: predicated region fallthrough
CT: control target
= control target key end

     0   :  { %s433_s0 = inlined_call_operand.vmem [shape: bf16[8,103], index: 0, kind: input, shape index: {}]   ;;  %s434_s1 = inlined_call_operand.vmem [shape: bf16[103,64], index: 1, kind: input, shape index: {}]   ;;  %s435_s2 = inlined_call_operand.vmem [shape: f32[1,64], index: 2, kind: input, shape index: {}]   ;;  %s436_s3 = inlined_call_operand.vmem [shape: f32[1,64], index: 3, kind: input, shape index: {}]   ;;  %s437_s4 = inlined_call_operand.<no memory space> [shape: f32[1,1], index: 4, kind: input, shape index: {}]   ;;  %s438_s5 = inlined_call_operand.hbm [shape: f32[2,8], index: 5, kind: output, shape index: {}]  }
   0x1   :  { %v10_v0 = vstv %s437_s4 }
   0x2   :  { %11 = vst [vmem:[#allocation2] sm:$0x1] %v10_v0 }
   0x3   :  { %v316_v1 = vld [vmem:[%s434_s1] sm:$0xff]   ;;  %v353_v2 = vmov 0.0   ;;  %v317_v3 = vld [vmem:[%s434_s1 + $0x8] sm:$0xff]   ;;  %v318_v4 = vld [vmem:[%s434_s1 + $0x10] sm:$0xff]   ;;  %vm354_vm0 = vmmov 0  }
   0x4   :  { %287 = vmatprep.subr.bf16.mxu0 %v353_v2  ;;  %305 = vmatprep.subr.mxu1 %v353_v2 }
   0x5   :  { %288 = vmatpush3.bf16.msra.mxu0 %v316_v1  ;;  %301 = vmatprep.mubr.msk.bf16.mxu0 %vm354_vm0, %v353_v2 }
   0x6   :  { %289 = vmatprep.subr.bf16.mxu0 %v353_v2 }
   0x9   :  { %290 = vmatpush3.bf16.msra.mxu0 %v317_v3 }
   0xa   :  { %291 = vmatprep.subr.bf16.mxu0 %v353_v2 }
   0xb   :  { %12 = vsyncpa [#allocation4], 0  ;;  %307 = vmatprep.mubr.msk.f32.mxu1 %vm354_vm0, %v353_v2  ;;  %v319_v5 = vld [vmem:[%s434_s1 + $0x18] sm:$0xff]   ;;  %vm88_vm1 = vcmask 1042432   ;;  %v320_v6 = vld [vmem:[%s434_s1 + $0x20] sm:$0xff]   ;;  %vm89_vm2 = vcmask 1043456   ;;  %v146_v27 = vlaneseq }
   0xc   :  { %v355_v7 = vmov 65535   ;;  %v321_v9 = vld [vmem:[%s434_s1 + $0x28] sm:$0xff]   ;;  %v322_v10 = vld [vmem:[%s434_s1 + $0x30] ss:$0 sps:$4 sm:$0xff]   ;;  %v24_v13 = vld [vmem:[%s433_s0] sm:$0xf] }
   0xd   :  { %292 = vmatpush3.bf16.msra.mxu0 %v318_v4  ;;  %v90_v8 = vsel %vm88_vm1, 4294967295, %v355_v7  ;;  %vm84_vm3 = vcmask 842752   ;;  %v140_v14 = vld [vmem:[#allocation2] sm:$0x1]  ;;  %v356_v15 = vmov 0   ;;  %vm150_vm4 = vcmask 523264  }
   0xe   :  { %293 = vmatprep.subr.bf16.mxu0 %v353_v2  ;;  %v91_v11 = vsel %vm89_vm2, %v90_v8, 0  ;;  %315 = vset.pattern.permute.xlu0 %v356_v15  ;;  %v266_v16 = vld [vmem:[%s435_s2] ss:$0 sm:$0xff]  ;;  %v147_v28 = vshrl.u32 %v146_v27, 7  ;;  %s357_s2 = smov [#allocation3]   ;;  %vm250_vm6 = vcmask 58368  }
   0xf   :  { %v93_v12 = vand.u32 %v322_v10, %v91_v11  ;;  %143 = vperm.xlu0 %315, %v140_v14   ;;  %v139_v26 = vld [vmem:[%s436_s3] sm:$0x1]  ;;  %s258_s3 = sshll.u32 %s357_s2, 4  ;;  %s259_s3 = int_to_ptr.vmem [resolvable:$true] %s258_s3 }
  0x10   :  { %v148_v29 = vsub.s32 0, %v147_v28  ;;  %vm238_vm5 = vcmp.eq.s32.totalorder %v147_v28, 0  ;;  %s329_s12 = scalar_lea.vmem %s259_s3, 32  ;;  %p334_p1 = scmp.lt.s32.totalorder %s259_s3, %s259_s3 }
  0x11   :  { %294 = vmatpush3.bf16.msra.mxu0 %v319_v5  ;;  %p330_p0 = scmp.ne.s32.totalorder %s259_s3, %s329_s12  ;;  %p335_p2 = scmp.lt.s32.totalorder %s329_s12, %s329_s12 }
  0x12   :  { %295 = vmatprep.subr.bf16.mxu0 %v353_v2 }
  0x13   :  { %p336_p3 = por %p335_p2, %p334_p1 }
  0x15   :  { %296 = vmatpush3.bf16.msra.mxu0 %v320_v6  ;;  %p337_p4 = pnand %p336_p3, %p330_p0 }
  0x16   :  { %297 = vmatprep.subr.bf16.mxu0 %v353_v2 }
  0x19   :  { %298 = vmatpush3.bf16.msra.mxu0 %v321_v9 }
  0x1a   :  { %299 = vmatprep.subr.bf16.mxu0 %v353_v2 }
  0x1d   :  { %300 = vmatpush3.bf16.msra.mxu0 %v93_v12 }
  0x20   :  { %302 = vmatmul.mubr.msk.bf16.vlgmr.msra.gmra.mrb[0].mxu0 %vm84_vm3, %v24_v13 }
  0x8e   :  { %v144_v30 = vpop.permute.xlu0 %143 }
  0x8f   :  { %v149_v31 = vrot.slane %v144_v30, %v148_v29 }
  0xf3   :  { %v129_v17 = vpop.f32.mrb[0].mxu0 }
  0xf4   :  { %v130_v18 = vadd.f32 %v266_v16, %v129_v17  ;;  %v303_v19 = vpop.f32.mrb[1].mxu0 }
  0xf5   :  { %v132_v20 = vpop.f32.mrb[2].mxu0 }
  0xf6   :  { %v135_v21 = vmul.f32 0.5, %v130_v18  ;;  %v304_v22 = vpop.f32.mrb[3].mxu0 }
  0xf8   :  { %323 = vtanh.f32 %v135_v21 }
 0x102   :  { %v324_v23 = vpop.eup %323 }
 0x103   :  { %v137_v24 = vmul.f32 0.5, %v324_v23 }
 0x105   :  { %v138_v25 = vadd.f32 0.5, %v137_v24 }
 0x107   :  { %306 = vmatpush3.xpose.msk.msra.mxu1 %vm150_vm4, %v138_v25 }
 0x10a   :  { %308 = vmatmul.mubr.msk.f32.vlgmr.msra.gmra.mrb[0].mxu1 %vm150_vm4, %v139_v26 }
 0x1dd   :  { %v223_v32 = vpop.f32.mrb[0].mxu1 }
 0x1de   :  { %v224_v33 = vadd.f32 %v223_v32, %v149_v31  ;;  %v309_v34 = vpop.f32.mrb[1].mxu1 }
 0x1e0   :  { %v228_v35 = vand.u32 2147483647, %v224_v33  ;;  %v227_v41 = vmax.f32 %v224_v33, 0.0 }
 0x1e2   :  { %v229_v36 = vsub.f32 0.0, %v228_v35 }
 0x1e4   :  { %v230_v37 = vmul.f32 1.442695, %v229_v36 }
 0x1e6   :  { %325 = vpow2.f32 %v230_v37 }
 0x1f0   :  { %v326_v38 = vpop.eup %325 }
 0x1f1   :  { %v232_v39 = vadd.f32 1.0, %v326_v38 }
 0x1f3   :  { %327 = vlog2.f32 %v232_v39 }
 0x1fd   :  { %v328_v40 = vpop.eup %327 }
 0x1fe   :  { %v234_v42 = vmul.f32 0.6931472, %v328_v40 }
 0x200   :  { %v235_v43 = vadd.f32 %v234_v42, %v227_v41 }
 0x202   :  { %v239_v44 = vsub.f32 0.0, %v235_v43  ;;  %v240_v45 = vsub.f32 %v224_v33, %v235_v43 }
 0x204   :  { %v248_v46 = vrot.slane %v240_v45, %v148_v29  ;;  %v244_v47 = vrot.slane %v239_v44, %v148_v29 }
 0x206   :  { %v249_v48 = vsel %vm238_vm5, %v244_v47, %v248_v46 }
 0x207   :  { %251 = vst.msk [vmem:[#allocation3] sm:$0x3] %vm250_vm6, %v249_v48 }
 0x208   :  { %340 = shalt.err (!%p337_p4)
}
 0x209   :  { %s341_s15 = scalar_lea.hbm %s438_s5, 32 }
 0x20a   :  { %p342_p5 = scmp.ne.s32.totalorder %s438_s5, %s341_s15  ;;  %p345_p6 = scmp.lt.u32.totalorder %s341_s15, %s438_s5 }
 0x20c   :  { %p347_p7 = pnand %p345_p6, %p342_p5 }
 0x20e   :  { %350 = shalt.err (!%p347_p7)
}
 0x20f   :  { %261 = dma.vmem_to_hbm [thread:$0]  %s259_s3, 32, %s438_s5, [#allocation4]  }
 0x210   :  { %351 = dma.done.wait [#allocation4], 32  }
 0x211   :  { %352 = vsyncadd [#allocation4], 4294967264 }
 0x212   :  { %265 = vsyncpa [#allocation4], 1 }

</bundles_post_ra>
